<compile_context>
chip_gen: v6e
topology: v6e:2x2x1
jax: 0.10.0
libtpu: 0.0.40
codegen_flags: <defaults>
</compile_context>

<pallas_src>
import functools

import jax
import jax.numpy as jnp
from jax.experimental import pallas as pl
from jax.experimental.pallas import tpu as pltpu


_NEG = -1e30  # finite "minus infinity" (avoids inf-inf NaNs in the online max)


def _d2d_ce_kernel(xr_ref, xc_ref, lr_ref, lc_ref,   # inputs
                   m_ref, l_ref,                     # outputs (resident accumulators)
                   *, shift, lane_w):
    """One (row_block, col_block) tile of the off-diagonal online reduction.

    xr_ref: [Tq, D]  rows, pre-normalized and pre-scaled by 1/temperature
    xc_ref: [Tk, D]  cols, pre-normalized
    lr_ref: [Tq, 1]  int32 labels (row view)
    lc_ref: [1, Tk]  int32 labels (col view)
    m_ref : [Tq, LW] running lane-local off-diagonal row max
    l_ref : [Tq, LW] running lane-local masked exp-sum (w.r.t. m_ref)
    """
    i = pl.program_id(0)          # row-block index  ("parallel")
    j = pl.program_id(1)          # col-block index  ("arbitrary", reduction axis)

    Tq = xr_ref.shape[0]
    Tk = xc_ref.shape[0]
    n_chunks = Tk // lane_w

    # ---- init the resident per-row-block accumulators at the first column step
    @pl.when(j == 0)
    def _init():
        m_ref[...] = jnp.full(m_ref.shape, _NEG, dtype=jnp.float32)
        l_ref[...] = jnp.zeros(l_ref.shape, dtype=jnp.float32)

    # ---- similarity tile on the MXU (bf16 operands, f32 accumulate).  The row
    # operand already carries 1/temperature, so the epilogue is a single add.
    s = jax.lax.dot_general(xr_ref[...], xc_ref[...],
                            (((1,), (1,)), ((), ())),
                            preferred_element_type=jnp.float32)      # [Tq, Tk]
    s = s + shift                                                    # (m_p-1)/T

    lr = lr_ref[...]                                                 # [Tq, 1]
    lc = lc_ref[...]                                                 # [1, Tk]

    # ---- lane-local running max (VPU only; diag masked only on diagonal tiles)
    def lane_max(sv):
        t = sv[:, 0:lane_w]
        for c in range(1, n_chunks):
            t = jnp.maximum(t, sv[:, c * lane_w:(c + 1) * lane_w])
        return t                                                     # [Tq, LW]

    m_prev = m_ref[...]
    row_lo = i * Tq
    col_lo = j * Tk
    touches_diag = jnp.logical_and(row_lo < col_lo + Tk, col_lo < row_lo + Tq)

    @pl.when(touches_diag)
    def _max_with_diag_mask():
        rids = row_lo + jax.lax.broadcasted_iota(jnp.int32, (Tq, Tk), 0)
        cids = col_lo + jax.lax.broadcasted_iota(jnp.int32, (Tq, Tk), 1)
        m_ref[...] = jnp.maximum(m_prev,
                                 lane_max(jnp.where(rids == cids, _NEG, s)))

    @pl.when(jnp.logical_not(touches_diag))
    def _max_plain():
        m_ref[...] = jnp.maximum(m_prev, lane_max(s))

    m_new = m_ref[...]

    # ---- rescale the running masked exp-sum once per tile, then add chunks.
    # Label mask is also False on the diagonal (label[i] == label[i]), and we
    # keep the select form so discarded overflow never becomes NaN.
    acc = l_ref[...] * jnp.exp(m_prev - m_new)
    for c in range(n_chunks):
        sl = slice(c * lane_w, (c + 1) * lane_w)
        e = jnp.exp(jnp.maximum(s[:, sl], 0.0) - m_new)   # relu(S) - running max
        acc = acc + jnp.where(lr != lc[:, sl], e, 0.0)
    l_ref[...] = acc


def _pick_tile(n, target, granule):
    """Largest divisor of n that is <= target and a multiple of granule; else n."""
    if n <= target:
        return n
    t = min(target, n)
    t -= t % granule
    while t >= granule:
        if n % t == 0:
            return t
        t -= granule
    return n


def data2data_cross_entropy_loss(embed, proxy, label, *, num_classes, temperature,
                                 m_p, block_q=None, block_k=None,
                                 matmul_dtype=jnp.bfloat16):
    """embed: [N, D], proxy: [N, D], label: [N] int in [0, num_classes)."""
    del num_classes  # only constrains the label range; the in-kernel compare
    # reproduces make_index_matrix(label)[label] semantics exactly.
    N, D = embed.shape
    eps = 1e-8
    inv_t = 1.0 / float(temperature)

    x = embed.astype(jnp.float32)
    p = proxy.astype(jnp.float32)

    # ---- O(N*D) prep in the wrapper: done exactly once, fused by XLA ----
    xn = jnp.sqrt(jnp.sum(x * x, axis=-1, keepdims=True))
    x_hat = x / jnp.maximum(xn, eps)
    pn = jnp.sqrt(jnp.sum(p * p, axis=-1, keepdims=True))
    p_hat = p / jnp.maximum(pn, eps)

    # positive (sample -> proxy) attraction term: rowwise, stays out of the kernel
    s2p = jnp.sum(x_hat * p_hat, axis=-1)                 # cos(embed, proxy)  [N]
    pos_attr = jnp.maximum((m_p - s2p) * inv_t, 0.0)      # [N]

    # matmul operands: 1/temperature folded into the row side; streamed narrow.
    row_op = (x_hat * inv_t).astype(matmul_dtype)         # [N, D]
    col_op = x_hat.astype(matmul_dtype)                   # [N, D]
    label_row = label.reshape(N, 1).astype(jnp.int32)     # O(N), never an [N,N] mask
    label_col = label.reshape(1, N).astype(jnp.int32)

    # ---- tiling (generation-aware defaults) ----
    gran_q = 16 if matmul_dtype == jnp.bfloat16 else 8    # bf16 sublane packing
    if block_q is None:
        target = 512                                      # cuts column re-streaming
        if N >= 2 * gran_q:
            target = min(target, max(gran_q, N // 2))     # >=2 row blocks (v7x: 2 TCs)
        Tq = _pick_tile(N, target, gran_q)
    else:
        Tq = block_q
    if block_k is None:
        if N % 256 == 0:
            Tk = 256                                      # matches 256-wide MXU
        elif N % 128 == 0:
            Tk = _pick_tile(N, 512, 128)
        else:
            Tk = N
    else:
        Tk = block_k
    assert N % Tq == 0 and N % Tk == 0, (N, Tq, Tk)
    assert Tq == N or Tq % 8 == 0, Tq
    assert Tk == N or Tk % 128 == 0, Tk
    LW = min(128, Tk)                                     # lane width of accumulators
    assert Tk % LW == 0, (Tk, LW)
    grid = (N // Tq, N // Tk)

    kernel = functools.partial(_d2d_ce_kernel,
                               shift=(float(m_p) - 1.0) * inv_t, lane_w=LW)

    # Scoped-VMEM: raise the limit only when the tiles actually need it (safe on
    # every generation; v7x has only 64 MiB physical per TensorCore).
    item = jnp.dtype(matmul_dtype).itemsize
    vmem_est = (2 * (Tq + Tk) * D * item        # double-buffered matmul operands
                + 2 * 2 * Tq * LW * 4           # two resident f32 accumulator outputs
                + 6 * Tq * Tk * 4)              # S tile + elementwise temporaries
    cp = dict(dimension_semantics=("parallel", "arbitrary"))
    if vmem_est > 12 * 1024 * 1024:
        cp["vmem_limit_bytes"] = int(min(64 * 1024 * 1024, 2 * vmem_est))

    m_lane, l_lane = pl.pallas_call(
        kernel,
        out_shape=(jax.ShapeDtypeStruct((N, LW), jnp.float32),
                   jax.ShapeDtypeStruct((N, LW), jnp.float32)),
        grid=grid,
        in_specs=[
            pl.BlockSpec((Tq, D), lambda i, j: (i, 0)),   # rows (loaded once per i)
            pl.BlockSpec((Tk, D), lambda i, j: (j, 0)),   # cols (dominant stream, bf16)
            pl.BlockSpec((Tq, 1), lambda i, j: (i, 0)),   # labels, row view
            pl.BlockSpec((1, Tk), lambda i, j: (0, j)),   # labels, col view
        ],
        out_specs=(pl.BlockSpec((Tq, LW), lambda i, j: (i, 0)),   # lane-local max
                   pl.BlockSpec((Tq, LW), lambda i, j: (i, 0))),  # lane-local exp-sum
        compiler_params=pltpu.CompilerParams(**cp),
    )(row_op, col_op, label_row, label_col)

    # ---- single O(N*128) cross-lane combine + O(N) finalize, all in XLA ----
    m_row = jnp.max(m_lane, axis=1, keepdims=True)                  # off-diag row max
    l_row = jnp.sum(l_lane * jnp.exp(m_lane - m_row), axis=1)       # masked exp-sum
    neg_repul = jnp.log(jnp.exp(-pos_attr) + l_row)
    return jnp.mean(pos_attr + neg_repul)


def _reference(embed, proxy, label, temperature, m_p):
    """Pure-JAX port of the PyTorch forward (O(N^2), for validation only)."""
    eps = 1e-8
    x = embed.astype(jnp.float32)
    N = x.shape[0]
    xn = jnp.sqrt(jnp.sum(x * x, axis=-1))
    cos = (x @ x.T) / jnp.maximum(xn[:, None] * xn[None, :], eps)
    S = (cos + m_p - 1.0) / temperature
    eye = jnp.eye(N, dtype=bool)
    sim_max = jnp.max(jnp.where(eye, -jnp.inf, S), axis=1, keepdims=True)
    sim = jnp.maximum(S, 0.0) - sim_max
    removal = (label[:, None] != label[None, :]) & (~eye)
    improved_sum = jnp.sum(jnp.where(removal, jnp.exp(sim), 0.0), axis=1)
    pnrm = jnp.sqrt(jnp.sum(proxy * proxy, axis=-1))
    s2p = jnp.sum(x * proxy, axis=-1) / jnp.maximum(xn * pnrm, eps)
    pos_attr = jnp.maximum((m_p - s2p) / temperature, 0.0)
    neg_repul = jnp.log(jnp.exp(-pos_attr) + improved_sum)
    return jnp.mean(pos_attr + neg_repul)


if __name__ == "__main__":
    TEMPERATURE = 0.5
    M_P = 0.98

    # ---- small single-tile case (module-sized demo): N=8 samples, D=32 ----
    NUM_CLASSES = 4
    N, D = 8, 32
    key = jax.random.PRNGKey(0)
    k_embed, k_proxy, k_label = jax.random.split(key, 3)
    embed = jax.random.normal(k_embed, (N, D), dtype=jnp.float32)
    proxy = jax.random.normal(k_proxy, (N, D), dtype=jnp.float32)
    label = jax.random.randint(k_label, (N,), 0, NUM_CLASSES, dtype=jnp.int32)

    ref = _reference(embed, proxy, label, TEMPERATURE, M_P)

    # exactness path: f32 matmul operands
    loss_f32 = jax.block_until_ready(data2data_cross_entropy_loss(
        embed, proxy, label, num_classes=NUM_CLASSES,
        temperature=TEMPERATURE, m_p=M_P, matmul_dtype=jnp.float32))
    assert jnp.allclose(loss_f32, ref, rtol=1e-4, atol=1e-4), (loss_f32, ref)

    # production path: bf16 streamed operands, f32 accumulation
    loss_bf16 = jax.block_until_ready(data2data_cross_entropy_loss(
        embed, proxy, label, num_classes=NUM_CLASSES,
        temperature=TEMPERATURE, m_p=M_P))
    assert jnp.allclose(loss_bf16, ref, rtol=2e-2, atol=2e-2), (loss_bf16, ref)

    # ---- multi-tile case exercising the online reduction + diagonal tiles ----
    NUM_CLASSES2 = 10
    N2, D2 = 256, 64
    k_e2, k_p2, k_l2 = jax.random.split(jax.random.PRNGKey(0), 3)
    embed2 = jax.random.normal(k_e2, (N2, D2), dtype=jnp.float32)
    proxy2 = jax.random.normal(k_p2, (N2, D2), dtype=jnp.float32)
    label2 = jax.random.randint(k_l2, (N2,), 0, NUM_CLASSES2, dtype=jnp.int32)

    ref2 = _reference(embed2, proxy2, label2, TEMPERATURE, M_P)

    # explicit small blocks (f32 exactness), hits diagonal and off-diagonal tiles
    loss2_f32 = jax.block_until_ready(data2data_cross_entropy_loss(
        embed2, proxy2, label2, num_classes=NUM_CLASSES2,
        temperature=TEMPERATURE, m_p=M_P, block_q=64, block_k=128,
        matmul_dtype=jnp.float32))
    assert jnp.allclose(loss2_f32, ref2, rtol=1e-4, atol=1e-4), (loss2_f32, ref2)

    # default generation-aware tiles (Tq=128, Tk=256 -> 2 lane chunks), bf16 streams
    loss2_bf16 = jax.block_until_ready(data2data_cross_entropy_loss(
        embed2, proxy2, label2, num_classes=NUM_CLASSES2,
        temperature=TEMPERATURE, m_p=M_P))
    assert jnp.allclose(loss2_bf16, ref2, rtol=2e-2, atol=2e-2), (loss2_bf16, ref2)

    print("KERNEL_OK")
</pallas_src>

<mosaic_0001>
module attributes {stable_mosaic.version = 11 : i64} {
  func.func @_d2d_ce_kernel(%arg0: i32, %arg1: i32, %arg2: memref<8x32xf32, #tpu.memory_space<vmem>>, %arg3: memref<8x32xf32, #tpu.memory_space<vmem>>, %arg4: memref<8x1xi32, #tpu.memory_space<vmem>>, %arg5: memref<1x8xi32, #tpu.memory_space<vmem>>, %arg6: memref<8x8xf32, #tpu.memory_space<vmem>>, %arg7: memref<8x8xf32, #tpu.memory_space<vmem>>) attributes {dimension_semantics = [#tpu.dimension_semantics<parallel>, #tpu.dimension_semantics<arbitrary>], iteration_bounds = array<i64: 1, 1>, scalar_prefetch = 0 : i64, scratch_operands = 0 : i64, tpu.core_type = #tpu.core_type<tc>, window_params = [{transform_indices = @transform_0, window_bounds = array<i64: 8, 32>}, {transform_indices = @transform_1, window_bounds = array<i64: 8, 32>}, {transform_indices = @transform_2, window_bounds = array<i64: 8, 1>}, {transform_indices = @transform_3, window_bounds = array<i64: 1, 8>}, {transform_indices = @transform_4, window_bounds = array<i64: 8, 8>}, {transform_indices = @transform_5, window_bounds = array<i64: 8, 8>}]} {
    %c0_i32 = arith.constant 0 : i32
    %0 = arith.cmpi eq, %arg1, %c0_i32 : i32
    %1 = arith.extui %0 : i1 to i32
    %c0_i32_0 = arith.constant 0 : i32
    %2 = arith.cmpi ne, %1, %c0_i32_0 : i32
    scf.if %2 {
      %cst_24 = arith.constant -1.000000e+30 : f32
      %39 = vector.broadcast %cst_24 : f32 to vector<8x8xf32>
      %c0_25 = arith.constant 0 : index
      %c0_26 = arith.constant 0 : index
      %40 = vector.load %arg6[%c0_25, %c0_26] : memref<8x8xf32, #tpu.memory_space<vmem>>, vector<8x8xf32>
      tpu.vector_store %arg6[%c0_25, %c0_26], %39 {strides = array<i32>} : memref<8x8xf32, #tpu.memory_space<vmem>>, vector<8x8xf32>,
      %cst_27 = arith.constant 0.000000e+00 : f32
      %41 = vector.broadcast %cst_27 : f32 to vector<8x8xf32>
      %c0_28 = arith.constant 0 : index
      %c0_29 = arith.constant 0 : index
      %42 = vector.load %arg7[%c0_28, %c0_29] : memref<8x8xf32, #tpu.memory_space<vmem>>, vector<8x8xf32>
      tpu.vector_store %arg7[%c0_28, %c0_29], %41 {strides = array<i32>} : memref<8x8xf32, #tpu.memory_space<vmem>>, vector<8x8xf32>,
    } else {
    }
    %c0 = arith.constant 0 : index
    %c0_1 = arith.constant 0 : index
    %3 = vector.load %arg2[%c0, %c0_1] : memref<8x32xf32, #tpu.memory_space<vmem>>, vector<8x32xf32>
    %c0_2 = arith.constant 0 : index
    %c0_3 = arith.constant 0 : index
    %4 = vector.load %arg3[%c0_2, %c0_3] : memref<8x32xf32, #tpu.memory_space<vmem>>, vector<8x32xf32>
    %cst = arith.constant dense<0.000000e+00> : vector<8x8xf32>
    %5 = tpu.matmul %3, %4, %cst {dimension_numbers = #tpu.dot_dimension_numbers<[1], [1], [0], [0], [0, 0, 1, 0], [], []>} : vector<8x32xf32>, vector<8x32xf32>, vector<8x8xf32> -> vector<8x8xf32>
    %cst_4 = arith.constant -4.000000e-02 : f32
    %6 = vector.broadcast %cst_4 : f32 to vector<8x8xf32>
    %7 = arith.addf %5, %6 : vector<8x8xf32>
    %c0_5 = arith.constant 0 : index
    %c0_6 = arith.constant 0 : index
    %8 = vector.load %arg4[%c0_5, %c0_6] : memref<8x1xi32, #tpu.memory_space<vmem>>, vector<8x1xi32>
    %c0_7 = arith.constant 0 : index
    %c0_8 = arith.constant 0 : index
    %9 = vector.load %arg5[%c0_7, %c0_8] : memref<1x8xi32, #tpu.memory_space<vmem>>, vector<1x8xi32>
    %c0_9 = arith.constant 0 : index
    %c0_10 = arith.constant 0 : index
    %10 = vector.load %arg6[%c0_9, %c0_10] : memref<8x8xf32, #tpu.memory_space<vmem>>, vector<8x8xf32>
    %c8_i32 = arith.constant 8 : i32
    %11 = arith.muli %arg0, %c8_i32 : i32
    %c8_i32_11 = arith.constant 8 : i32
    %12 = arith.muli %arg1, %c8_i32_11 : i32
    %c8_i32_12 = arith.constant 8 : i32
    %13 = arith.addi %12, %c8_i32_12 : i32
    %14 = arith.cmpi slt, %11, %13 : i32
    %c8_i32_13 = arith.constant 8 : i32
    %15 = arith.addi %11, %c8_i32_13 : i32
    %16 = arith.cmpi slt, %12, %15 : i32
    %17 = arith.andi %14, %16 : i1
    %18 = arith.extui %17 : i1 to i32
    %c0_i32_14 = arith.constant 0 : i32
    %19 = arith.cmpi ne, %18, %c0_i32_14 : i32
    scf.if %19 {
      %39 = tpu.iota {dimensions = array<i32: 0>} : vector<8x8xi32>
      %40 = vector.broadcast %11 : i32 to vector<8x8xi32>
      %41 = arith.addi %40, %39 : vector<8x8xi32>
      %42 = tpu.iota {dimensions = array<i32: 1>} : vector<8x8xi32>
      %43 = vector.broadcast %12 : i32 to vector<8x8xi32>
      %44 = arith.addi %43, %42 : vector<8x8xi32>
      %45 = arith.cmpi eq, %41, %44 : vector<8x8xi32>
      %cst_24 = arith.constant -1.000000e+30 : f32
      %46 = vector.broadcast %cst_24 : f32 to vector<8x8xf32>
      %47 = arith.select %45, %46, %7 : vector<8x8xi1>, vector<8x8xf32>
      %48 = arith.maximumf %10, %47 : vector<8x8xf32>
      %c0_25 = arith.constant 0 : index
      %c0_26 = arith.constant 0 : index
      %49 = vector.load %arg6[%c0_25, %c0_26] : memref<8x8xf32, #tpu.memory_space<vmem>>, vector<8x8xf32>
      tpu.vector_store %arg6[%c0_25, %c0_26], %48 {strides = array<i32>} : memref<8x8xf32, #tpu.memory_space<vmem>>, vector<8x8xf32>,
    } else {
    }
    %true = arith.constant true
    %20 = arith.xori %17, %true : i1
    %21 = arith.extui %20 : i1 to i32
    %c0_i32_15 = arith.constant 0 : i32
    %22 = arith.cmpi ne, %21, %c0_i32_15 : i32
    scf.if %22 {
      %39 = arith.maximumf %10, %7 : vector<8x8xf32>
      %c0_24 = arith.constant 0 : index
      %c0_25 = arith.constant 0 : index
      %40 = vector.load %arg6[%c0_24, %c0_25] : memref<8x8xf32, #tpu.memory_space<vmem>>, vector<8x8xf32>
      tpu.vector_store %arg6[%c0_24, %c0_25], %39 {strides = array<i32>} : memref<8x8xf32, #tpu.memory_space<vmem>>, vector<8x8xf32>,
    } else {
    }
    %c0_16 = arith.constant 0 : index
    %c0_17 = arith.constant 0 : index
    %23 = vector.load %arg6[%c0_16, %c0_17] : memref<8x8xf32, #tpu.memory_space<vmem>>, vector<8x8xf32>
    %c0_18 = arith.constant 0 : index
    %c0_19 = arith.constant 0 : index
    %24 = vector.load %arg7[%c0_18, %c0_19] : memref<8x8xf32, #tpu.memory_space<vmem>>, vector<8x8xf32>
    %25 = arith.subf %10, %23 : vector<8x8xf32>
    %26 = math.exp %25 : vector<8x8xf32>
    %27 = arith.mulf %24, %26 : vector<8x8xf32>
    %cst_20 = arith.constant 0.000000e+00 : f32
    %28 = vector.broadcast %cst_20 : f32 to vector<8x8xf32>
    %29 = arith.maximumf %7, %28 : vector<8x8xf32>
    %30 = arith.subf %29, %23 : vector<8x8xf32>
    %31 = math.exp %30 : vector<8x8xf32>
    %32 = vector.broadcast %8 : vector<8x1xi32> to vector<8x8xi32>
    %33 = vector.broadcast %9 : vector<1x8xi32> to vector<8x8xi32>
    %34 = arith.cmpi ne, %32, %33 : vector<8x8xi32>
    %cst_21 = arith.constant 0.000000e+00 : f32
    %35 = vector.broadcast %cst_21 : f32 to vector<8x8xf32>
    %36 = arith.select %34, %31, %35 : vector<8x8xi1>, vector<8x8xf32>
    %37 = arith.addf %27, %36 : vector<8x8xf32>
    %c0_22 = arith.constant 0 : index
    %c0_23 = arith.constant 0 : index
    %38 = vector.load %arg7[%c0_22, %c0_23] : memref<8x8xf32, #tpu.memory_space<vmem>>, vector<8x8xf32>
    tpu.vector_store %arg7[%c0_22, %c0_23], %37 {strides = array<i32>} : memref<8x8xf32, #tpu.memory_space<vmem>>, vector<8x8xf32>,
    return
  }
  func.func @transform_0(%arg0: i32, %arg1: i32) -> (i32, i32) {
    %c0_i32 = arith.constant 0 : i32
    %c0_i32_0 = arith.constant 0 : i32
    return %arg0, %c0_i32 : i32, i32
  }
  func.func @transform_1(%arg0: i32, %arg1: i32) -> (i32, i32) {
    %c0_i32 = arith.constant 0 : i32
    %c0_i32_0 = arith.constant 0 : i32
    return %arg1, %c0_i32 : i32, i32
  }
  func.func @transform_2(%arg0: i32, %arg1: i32) -> (i32, i32) {
    %c0_i32 = arith.constant 0 : i32
    %c0_i32_0 = arith.constant 0 : i32
    return %arg0, %c0_i32 : i32, i32
  }
  func.func @transform_3(%arg0: i32, %arg1: i32) -> (i32, i32) {
    %c0_i32 = arith.constant 0 : i32
    %c0_i32_0 = arith.constant 0 : i32
    return %c0_i32, %arg1 : i32, i32
  }
  func.func @transform_4(%arg0: i32, %arg1: i32) -> (i32, i32) {
    %c0_i32 = arith.constant 0 : i32
    %c0_i32_0 = arith.constant 0 : i32
    return %arg0, %c0_i32 : i32, i32
  }
  func.func @transform_5(%arg0: i32, %arg1: i32) -> (i32, i32) {
    %c0_i32 = arith.constant 0 : i32
    %c0_i32_0 = arith.constant 0 : i32
    return %arg0, %c0_i32 : i32, i32
  }
}

</mosaic_0001>

<bundles_post_ra>
// kernel: tpu_custom_call.1
= control target key start
LH: loop header
LB: loop body
LE: loop exit
PB: predicated region body
PF: predicated region fallthrough
CT: control target
= control target key end

     0   :  { %11 = vsyncpa [#allocation3], 0  ;;  %s349_s0 = inlined_call_operand.vmem [shape: f32[8,32], index: 0, kind: input, shape index: {}]   ;;  %s350_s1 = inlined_call_operand.hbm [shape: f32[8,32], index: 1, kind: input, shape index: {}]   ;;  %s351_s2 = inlined_call_operand.vmem [shape: s32[8,1], index: 2, kind: input, shape index: {}]   ;;  %s352_s3 = inlined_call_operand.vmem [shape: s32[1,8], index: 3, kind: input, shape index: {}]   ;;  %s353_s4 = inlined_call_operand.hbm [shape: f32[8,8], index: 4, kind: output, shape index: {0}]   ;;  %s354_s5 = inlined_call_operand.hbm [shape: f32[8,8], index: 5, kind: output, shape index: {1}]  }
   0x1   :  { %12 = vsyncpa [#allocation4], 0 }
   0x2   :  { %13 = vsyncpa [#allocation7], 0  ;;  %s290_s18 = smov [#allocation2]  }
   0x3   :  { %s22_s19 = sshll.u32 %s290_s18, 4  ;;  %s23_s19 = int_to_ptr.vmem [resolvable:$true] %s22_s19 }
   0x4   :  { %s232_s20 = scalar_lea.vmem %s23_s19, 128  ;;  %p237_p1 = scmp.lt.s32.totalorder %s23_s19, %s23_s19 }
   0x5   :  { %p233_p0 = scmp.ne.s32.totalorder %s23_s19, %s232_s20  ;;  %p238_p2 = scmp.lt.s32.totalorder %s232_s20, %s232_s20 }
   0x7   :  { %p239_p3 = por %p238_p2, %p237_p1 }
   0x9   :  { %p240_p4 = pnand %p239_p3, %p233_p0 }
   0xb   :  { %243 = shalt.err (!%p240_p4)
}
   0xc   :  { %25 = dma.hbm_to_vmem [thread:$0]  %s350_s1, 128, %s23_s19, [#allocation3]  }
   0xd   :  { %284 = dma.done.wait [#allocation3], 128  }
   0xe   :  { %285 = vsyncadd [#allocation3], 4294967168  ;;  %vm37_vm0 = vcmask 64512   ;;  %v291_v0 = vmov 0.0   ;;  %vm292_vm1 = vmmov 0   ;;  %v293_v1 = vmov 0  }
   0xf   :  { %39 = vst.msk [vmem:[#allocation6] sm:$0xff] %vm37_vm0, %v291_v0  ;;  %207 = vmatprep.subr.mxu0 %v291_v0  ;;  %209 = vmatprep.mubr.msk.f32.mxu0 %vm292_vm1, %v291_v0  ;;  %v294_v2 = vmov -1e+30   ;;  %vm42_vm2 = vcmask 261120   ;;  %v41_v3 = vld [vmem:[#allocation2] sm:$0xff]  ;;  %v132_v6 = vlaneseq  ;;  %s295_s26 = smov [#allocation5]  }
  0x10   :  { %219 = vset.pattern.permute.xlu0 %v293_v1  ;;  %38 = vst.msk [vmem:[#allocation5] sm:$0xff] %vm37_vm0, %v294_v2  ;;  %v119_v4 = vld [vmem:[%s351_s2] sm:$0xff]  ;;  %208 = vmatpush3.xpose.msk.msra.mxu0 %vm42_vm2, %v41_v3  ;;  %s179_s27 = sshll.u32 %s295_s26, 4  ;;  %s180_s27 = int_to_ptr.vmem [resolvable:$true] %s179_s27 }
  0x11   :  { %v40_v5 = vld [vmem:[%s349_s0] sm:$0xff]  ;;  %162 = vperm.xlu0 %219, %v119_v4   ;;  %v133_v7 = vshrl.u32 %v132_v6, 7  ;;  %v137_v8 = vand.u32 127, %v132_v6  ;;  %s244_s2 = scalar_lea.vmem %s180_s27, 128  ;;  %p249_p6 = scmp.lt.s32.totalorder %s180_s27, %s180_s27 }
  0x12   :  { %p245_p5 = scmp.ne.s32.totalorder %s180_s27, %s244_s2  ;;  %p250_p7 = scmp.lt.s32.totalorder %s244_s2, %s244_s2 }
  0x13   :  { %210 = vmatmul.mubr.msk.f32.vlgmr.msra.gmra.mxu0 %vm42_vm2, %v40_v5  ;;  %vm140_vm3 = vcmp.eq.s32.totalorder %v133_v7, %v137_v8 }
  0x14   :  { %p251_p8 = por %p250_p7, %p249_p6 }
  0x16   :  { %p252_p9 = pnand %p251_p8, %p245_p5 }
  0x17   :  { %v121_v11 = vld [vmem:[#allocation5] sm:$0xff] }
  0xd3   :  { %v115_v9 = vpop.f32.mrf.mxu0 }
  0xd4   :  { %v116_v10 = vadd.f32 -0.04, %v115_v9 }
  0xd5   :  { %v211_v12 = vpop.f32.mrf.mxu0 }
  0xd6   :  { %v141_v13 = vsel %vm140_vm3, -1e+30, %v116_v10 }
  0xd7   :  { %v142_v14 = vmax.f32 %v121_v11, %v141_v13 }
  0xd9   :  { %144 = vst.msk [vmem:[#allocation5] sm:$0xff] %vm37_vm0, %v142_v14 }
  0xda   :  { %255 = shalt.err (!%p252_p9)
}
  0xdb   :  { %182 = dma.vmem_to_hbm [thread:$0]  %s180_s27, 128, %s353_s4, [#allocation4]   ;;  %v157_v15 = vmax.f32 %v116_v10, 0.0  ;;  %v204_v21 = vld [vmem:[%s352_s3] ss:$0 sm:$0xff]  ;;  %v163_v22 = vpop.permute.xlu0 %162  ;;  %v152_v23 = vld [vmem:[#allocation6] sm:$0xff] }
  0xdc   :  { %vm168_vm4 = vcmp.ne.s32.totalorder %v163_v22, %v204_v21  ;;  %s296_s6 = smov [#allocation6]  }
  0xdd   :  { %s189_s7 = sshll.u32 %s296_s6, 4  ;;  %s190_s7 = int_to_ptr.vmem [resolvable:$true] %s189_s7 }
  0xde   :  { %s264_s4 = scalar_lea.vmem %s190_s7, 128  ;;  %p269_p11 = scmp.lt.s32.totalorder %s190_s7, %s190_s7 }
  0xdf   :  { %p265_p10 = scmp.ne.s32.totalorder %s190_s7, %s264_s4  ;;  %p270_p12 = scmp.lt.s32.totalorder %s264_s4, %s264_s4 }
  0xe0   :  { %v151_v16 = vld [vmem:[#allocation5] sm:$0xff] }
  0xe1   :  { %v153_v17 = vsub.f32 %v121_v11, %v151_v16  ;;  %v158_v18 = vsub.f32 %v157_v15, %v151_v16  ;;  %p271_p13 = por %p270_p12, %p269_p11 }
  0xe3   :  { %v154_v19 = vmul.f32 1.442695, %v153_v17  ;;  %v159_v20 = vmul.f32 1.442695, %v158_v18  ;;  %p272_p0 = pnand %p271_p13, %p265_p10 }
  0xe5   :  { %220 = vpow2.f32 %v154_v19 }
  0xe6   :  { %222 = vpow2.f32 %v159_v20 }
  0xf2   :  { %v221_v24 = vpop.eup %220 }
  0xf3   :  { %v223_v25 = vpop.eup %222  ;;  %v156_v26 = vmul.f32 %v221_v24, %v152_v23 }
  0xf4   :  { %v169_v27 = vsel %vm168_vm4, %v223_v25, 0.0 }
  0xf5   :  { %v170_v28 = vadd.f32 %v169_v27, %v156_v26 }
  0xf7   :  { %172 = vst.msk [vmem:[#allocation6] sm:$0xff] %vm37_vm0, %v170_v28 }
  0xf8   :  { %275 = shalt.err (!%p272_p0)
}
  0xf9   :  { %192 = dma.vmem_to_hbm [thread:$0]  %s190_s7, 128, %s354_s5, [#allocation7]  }
  0xfa   :  { %286 = dma.done.wait [#allocation4], 128  }
  0xfb   :  { %287 = vsyncadd [#allocation4], 4294967168 }
  0xfc   :  { %288 = dma.done.wait [#allocation7], 128  }
  0xfd   :  { %289 = vsyncadd [#allocation7], 4294967168 }
  0xfe   :  { %199 = vsyncpa [#allocation3], 1 }
  0xff   :  { %200 = vsyncpa [#allocation4], 1 }
 0x100   :  { %201 = vsyncpa [#allocation7], 1 }

</bundles_post_ra>
